<compile_context>
chip_gen: v7x
topology: tpu7x:2x2x1
jax: 0.10.0
libtpu: 0.0.40
codegen_flags: <defaults>
</compile_context>

<pallas_src>
import jax
import jax.numpy as jnp
from jax.experimental import pallas as pl
from jax.experimental.pallas import tpu as pltpu

N_EMBD = 64
N_HEAD = 4
HEAD_SIZE = N_EMBD // N_HEAD
BLOCK_SIZE = 32
LN_EPS = 1e-5
NEG_INF = -1e30  # finite large-negative mask (NaN-safe vs -inf)


def _layernorm(v, g, b):
    mu = jnp.mean(v, axis=-1, keepdims=True)
    var = jnp.mean((v - mu) ** 2, axis=-1, keepdims=True)
    return (v - mu) * jax.lax.rsqrt(var + LN_EPS) * g + b


def _erf(x):
    # Abramowitz & Stegun 7.1.26, max abs error ~1.5e-7: well inside the 1e-4
    # parity budget vs the exact-erf nn.GELU(), and uses only exp/VPU ops.
    ax = jnp.abs(x)
    t = 1.0 / (1.0 + 0.3275911 * ax)
    poly = t * (0.254829592 + t * (-0.284496736 + t * (1.421413741 +
                t * (-1.453152027 + t * 1.061405429))))
    y = 1.0 - poly * jnp.exp(-ax * ax)
    return jnp.where(x < 0.0, -y, y)


def _gelu_exact(x):
    return 0.5 * x * (1.0 + _erf(x * 0.7071067811865476))


def block_kernel(x_ref,
                 wqkv_ref, wo_ref, bo_ref,
                 ln1g_ref, ln1b_ref, ln2g_ref, ln2b_ref,
                 w1_ref, b1_ref, w2_ref, b2_ref,
                 o_ref):
    tb, T, C = x_ref.shape
    rows = tb * T
    mm_dtype = wqkv_ref.dtype  # operand dtype of the big matmuls (f32 default)

    # (tb, T, C) -> (tb*T, C): leading-dim merge, lane dim untouched.
    x = x_ref[...].astype(jnp.float32).reshape(rows, C)

    # ---- ln1 + multi-head causal self-attention ----
    xn = _layernorm(x, ln1g_ref[...], ln1b_ref[...])

    # Fused QKV projection: one lane-dense (rows, 3C) matmul on the MXU.
    qkv = jnp.dot(xn.astype(mm_dtype), wqkv_ref[...],
                  preferred_element_type=jnp.float32)
    qkv = qkv.reshape(tb, T, 3 * C)          # split rows back to (batch, seq)

    # NOTE: PyTorch source scales by C**0.5 with C = n_embd (NOT head_size).
    scale = 1.0 / (C ** 0.5)

    # Additive causal mask, kept at (1, T, T); broadcast happens in the add.
    row_i = jax.lax.broadcasted_iota(jnp.int32, (T, T), 0)
    col_i = jax.lax.broadcasted_iota(jnp.int32, (T, T), 1)
    mask = jnp.where(col_i <= row_i, 0.0, NEG_INF)[None, :, :]

    pv_heads = []
    for h in range(N_HEAD):
        lo, hi = h * HEAD_SIZE, (h + 1) * HEAD_SIZE
        q = qkv[:, :, lo:hi]                      # (tb, T, hs)
        k = qkv[:, :, C + lo:C + hi]              # (tb, T, hs)
        v = qkv[:, :, 2 * C + lo:2 * C + hi]      # (tb, T, hs)

        s = jnp.einsum('bqd,bkd->bqk', q, k,
                       preferred_element_type=jnp.float32) * scale + mask
        s = s - jnp.max(s, axis=-1, keepdims=True)
        p = jnp.exp(s)
        # exact reciprocal kept to preserve 1e-4 parity; negligible cost here.
        p = p * pl.reciprocal(jnp.sum(p, axis=-1, keepdims=True), approx=False)
        # TODO(synk): attention-weight dropout skipped (inference mode).
        pv_heads.append(jnp.einsum('bqk,bkd->bqd', p, v,
                                   preferred_element_type=jnp.float32))

    # Single lane concat (XLU slot) + ONE K=C output projection, replacing
    # N_HEAD tiny K=HEAD_SIZE pushes + N_HEAD full-width VPU adds.
    attn = jnp.concatenate(pv_heads, axis=-1).reshape(rows, C)
    proj = jnp.dot(attn.astype(wo_ref.dtype), wo_ref[...],
                   preferred_element_type=jnp.float32)
    # TODO(synk): output-projection dropout skipped (inference mode).
    x1 = x + proj + bo_ref[...]

    # ---- ln2 + feed-forward (Linear -> GELU -> Linear) ----
    xn2 = _layernorm(x1, ln2g_ref[...], ln2b_ref[...])
    h1 = jnp.dot(xn2.astype(mm_dtype), w1_ref[...],
                 preferred_element_type=jnp.float32) + b1_ref[...]
    h1 = _gelu_exact(h1)                          # nn.GELU() default = exact erf
    h2 = jnp.dot(h1.astype(mm_dtype), w2_ref[...],
                 preferred_element_type=jnp.float32) + b2_ref[...]
    # TODO(synk): feed-forward dropout skipped (inference mode).

    y = x1 + h2
    o_ref[...] = y.reshape(tb, T, C).astype(o_ref.dtype)


def _pick_batch_tile(B, T, rows_target=256, rows_cap=4096):
    """Batch elements folded per grid step.

    * Fold enough batch that each step feeds the MXU ~rows_target rows
      (fills the 128/256-wide MXU M dim, amortizes ~0.35 us/step), capped so
      ~4 KB/row of f32 intermediates stays well inside v7x's 32 MiB scoped /
      64 MiB physical VMEM.
    * Keep >= 2 grid steps whenever B allows (without shrinking a step by more
      than ~2x) so the "parallel" axis shards across v7x's two TensorCores;
      costless on v5e/v6e beyond one extra step.
    """
    divisors = [d for d in range(1, B + 1) if B % d == 0]
    fits = [d for d in divisors if d * T <= rows_cap] or [1]
    reach = [d for d in fits if d * T >= rows_target]
    tb = reach[0] if reach else fits[-1]
    if B > 1 and B // tb < 2:
        half = max(d for d in divisors if d < B)
        if 2 * half >= tb:          # prefer 2 steps of >= half the rows each
            tb = half
    return tb


def transformer_block(x, params, *, compute_dtype=jnp.float32):
    (wk, wq, wv, wo, bo, ln1g, ln1b, ln2g, ln2b, w1, b1, w2, b2) = params
    B, T, C = x.shape
    assert C == N_EMBD and T <= BLOCK_SIZE

    # Fuse the K/Q/V weights once on the XLA side: (C, 3C), Q|K|V order.
    wqkv = jnp.concatenate([wq, wk, wv], axis=1)

    # Big-matmul operand dtype.  bf16 (f32 accumulate) gives ~3x MXU throughput
    # and halves weight VMEM/DMA on v6e/v7x; f32 kept as default so the output
    # matches the f32 PyTorch module to 1e-4.
    wqkv = wqkv.astype(compute_dtype)
    wo_c = wo.astype(compute_dtype)
    w1_c = w1.astype(compute_dtype)
    w2_c = w2.astype(compute_dtype)

    tb = _pick_batch_tile(B, T)
    nb = B // tb

    full = lambda shape: pl.BlockSpec(shape, lambda i: (0,) * len(shape))

    return pl.pallas_call(
        block_kernel,
        out_shape=jax.ShapeDtypeStruct((B, T, C), x.dtype),
        grid_spec=pltpu.PrefetchScalarGridSpec(
            num_scalar_prefetch=0,
            grid=(nb,),
            in_specs=[
                pl.BlockSpec((tb, T, C), lambda i: (i, 0, 0)),   # x
                full((C, 3 * C)),                                # wqkv
                full((C, C)),                                    # wo
                full((1, C)),                                    # bo
                full((1, C)),                                    # ln1 gamma
                full((1, C)),                                    # ln1 beta
                full((1, C)),                                    # ln2 gamma
                full((1, C)),                                    # ln2 beta
                full((C, 4 * C)),                                # w1
                full((1, 4 * C)),                                # b1
                full((4 * C, C)),                                # w2
                full((1, C)),                                    # b2
            ],
            out_specs=pl.BlockSpec((tb, T, C), lambda i: (i, 0, 0)),
        ),
        compiler_params=pltpu.CompilerParams(
            dimension_semantics=("parallel",),
            vmem_limit_bytes=32 * 1024 * 1024),
    )(x, wqkv, wo_c, bo, ln1g, ln1b, ln2g, ln2b, w1_c, b1, w2_c, b2)


def reference_block(x, params):
    (wk, wq, wv, wo, bo, ln1g, ln1b, ln2g, ln2b, w1, b1, w2, b2) = params
    x = x.astype(jnp.float32)
    xn = _layernorm(x, ln1g, ln1b)
    T = x.shape[1]
    causal = jnp.tril(jnp.ones((T, T), dtype=bool))
    scale = 1.0 / (N_EMBD ** 0.5)
    outs = []
    for h in range(N_HEAD):
        lo, hi = h * HEAD_SIZE, (h + 1) * HEAD_SIZE
        k = xn @ wk[:, lo:hi]
        q = xn @ wq[:, lo:hi]
        v = xn @ wv[:, lo:hi]
        s = jnp.einsum("btd,bsd->bts", q, k) * scale
        s = jnp.where(causal[None], s, -jnp.inf)
        p = jax.nn.softmax(s, axis=-1)
        outs.append(jnp.einsum("bts,bsd->btd", p, v))
    attn = jnp.concatenate(outs, axis=-1)
    x1 = x + (attn @ wo + bo)
    xn2 = _layernorm(x1, ln2g, ln2b)
    h1 = jax.nn.gelu(xn2 @ w1 + b1, approximate=False)
    return x1 + (h1 @ w2 + b2)


def init_params(key):
    C = N_EMBD
    ks = jax.random.split(key, 8)
    sc = 0.02
    wk = sc * jax.random.normal(ks[0], (C, C), jnp.float32)
    wq = sc * jax.random.normal(ks[1], (C, C), jnp.float32)
    wv = sc * jax.random.normal(ks[2], (C, C), jnp.float32)
    wo = sc * jax.random.normal(ks[3], (C, C), jnp.float32)
    bo = sc * jax.random.normal(ks[4], (1, C), jnp.float32)
    ln1g = jnp.ones((1, C), jnp.float32)
    ln1b = jnp.zeros((1, C), jnp.float32)
    ln2g = jnp.ones((1, C), jnp.float32)
    ln2b = jnp.zeros((1, C), jnp.float32)
    w1 = sc * jax.random.normal(ks[5], (C, 4 * C), jnp.float32)
    b1 = sc * jax.random.normal(ks[6], (1, 4 * C), jnp.float32)
    w2 = sc * jax.random.normal(ks[7], (4 * C, C), jnp.float32)
    b2 = jnp.zeros((1, C), jnp.float32)
    return (wk, wq, wv, wo, bo, ln1g, ln1b, ln2g, ln2b, w1, b1, w2, b2)


if __name__ == "__main__":
    key = jax.random.PRNGKey(0)
    kx, kp = jax.random.split(key)

    B, T, C = 2, 8, N_EMBD
    x = jax.random.normal(kx, (B, T, C), jnp.float32)
    params = init_params(kp)

    out = jax.block_until_ready(transformer_block(x, params))
    ref = jax.block_until_ready(reference_block(x, params))

    assert out.shape == (B, T, C)
    err = float(jnp.max(jnp.abs(out - ref)))
    assert jnp.allclose(out, ref, atol=1e-4, rtol=1e-4), f"max abs err {err}"
    print("KERNEL_OK")
</pallas_src>

<mosaic_0001>
module attributes {stable_mosaic.version = 11 : i64} {
  func.func @block_kernel(%arg0: i32, %arg1: memref<1x8x64xf32, #tpu.memory_space<vmem>>, %arg2: memref<64x192xf32, #tpu.memory_space<vmem>>, %arg3: memref<64x64xf32, #tpu.memory_space<vmem>>, %arg4: memref<1x64xf32, #tpu.memory_space<vmem>>, %arg5: memref<1x64xf32, #tpu.memory_space<vmem>>, %arg6: memref<1x64xf32, #tpu.memory_space<vmem>>, %arg7: memref<1x64xf32, #tpu.memory_space<vmem>>, %arg8: memref<1x64xf32, #tpu.memory_space<vmem>>, %arg9: memref<64x256xf32, #tpu.memory_space<vmem>>, %arg10: memref<1x256xf32, #tpu.memory_space<vmem>>, %arg11: memref<256x64xf32, #tpu.memory_space<vmem>>, %arg12: memref<1x64xf32, #tpu.memory_space<vmem>>, %arg13: memref<1x8x64xf32, #tpu.memory_space<vmem>>) attributes {dimension_semantics = [#tpu.dimension_semantics<parallel>], iteration_bounds = array<i64: 2>, scalar_prefetch = 0 : i64, scratch_operands = 0 : i64, tpu.core_type = #tpu.core_type<tc>, window_params = [{transform_indices = @transform_0, window_bounds = array<i64: 1, 8, 64>}, {pipeline_mode = #tpu.pipeline_mode<synchronous>, transform_indices = @transform_1, window_bounds = array<i64: 64, 192>}, {pipeline_mode = #tpu.pipeline_mode<synchronous>, transform_indices = @transform_2, window_bounds = array<i64: 64, 64>}, {pipeline_mode = #tpu.pipeline_mode<synchronous>, transform_indices = @transform_3, window_bounds = array<i64: 1, 64>}, {pipeline_mode = #tpu.pipeline_mode<synchronous>, transform_indices = @transform_4, window_bounds = array<i64: 1, 64>}, {pipeline_mode = #tpu.pipeline_mode<synchronous>, transform_indices = @transform_5, window_bounds = array<i64: 1, 64>}, {pipeline_mode = #tpu.pipeline_mode<synchronous>, transform_indices = @transform_6, window_bounds = array<i64: 1, 64>}, {pipeline_mode = #tpu.pipeline_mode<synchronous>, transform_indices = @transform_7, window_bounds = array<i64: 1, 64>}, {pipeline_mode = #tpu.pipeline_mode<synchronous>, transform_indices = @transform_8, window_bounds = array<i64: 64, 256>}, {pipeline_mode = #tpu.pipeline_mode<synchronous>, transform_indices = @transform_9, window_bounds = array<i64: 1, 256>}, {pipeline_mode = #tpu.pipeline_mode<synchronous>, transform_indices = @transform_10, window_bounds = array<i64: 256, 64>}, {pipeline_mode = #tpu.pipeline_mode<synchronous>, transform_indices = @transform_11, window_bounds = array<i64: 1, 64>}, {transform_indices = @transform_12, window_bounds = array<i64: 1, 8, 64>}]} {
    %c0 = arith.constant 0 : index
    %c0_0 = arith.constant 0 : index
    %c0_1 = arith.constant 0 : index
    %0 = vector.load %arg1[%c0, %c0_0, %c0_1] : memref<1x8x64xf32, #tpu.memory_space<vmem>>, vector<1x8x64xf32>
    %1 = vector.shape_cast %0 : vector<1x8x64xf32> to vector<8x64xf32>
    %c0_2 = arith.constant 0 : index
    %c0_3 = arith.constant 0 : index
    %2 = vector.load %arg5[%c0_2, %c0_3] : memref<1x64xf32, #tpu.memory_space<vmem>>, vector<1x64xf32>
    %c0_4 = arith.constant 0 : index
    %c0_5 = arith.constant 0 : index
    %3 = vector.load %arg6[%c0_4, %c0_5] : memref<1x64xf32, #tpu.memory_space<vmem>>, vector<1x64xf32>
    %cst = arith.constant dense<0.000000e+00> : vector<8xf32>
    %4 = vector.multi_reduction <add>, %1, %cst [1] : vector<8x64xf32> to vector<8xf32>
    %5 = vector.shape_cast %4 : vector<8xf32> to vector<8x1xf32>
    %cst_6 = arith.constant 6.400000e+01 : f32
    %6 = vector.broadcast %cst_6 : f32 to vector<8x1xf32>
    %7 = arith.divf %5, %6 : vector<8x1xf32>
    %8 = vector.broadcast %7 : vector<8x1xf32> to vector<8x64xf32>
    %9 = arith.subf %1, %8 : vector<8x64xf32>
    %10 = arith.mulf %9, %9 : vector<8x64xf32>
    %cst_7 = arith.constant dense<0.000000e+00> : vector<8xf32>
    %11 = vector.multi_reduction <add>, %10, %cst_7 [1] : vector<8x64xf32> to vector<8xf32>
    %12 = vector.shape_cast %11 : vector<8xf32> to vector<8x1xf32>
    %cst_8 = arith.constant 6.400000e+01 : f32
    %13 = vector.broadcast %cst_8 : f32 to vector<8x1xf32>
    %14 = arith.divf %12, %13 : vector<8x1xf32>
    %15 = vector.broadcast %7 : vector<8x1xf32> to vector<8x64xf32>
    %16 = arith.subf %1, %15 : vector<8x64xf32>
    %cst_9 = arith.constant 9.99999974E-6 : f32
    %17 = vector.broadcast %cst_9 : f32 to vector<8x1xf32>
    %18 = arith.addf %14, %17 : vector<8x1xf32>
    %19 = math.rsqrt %18 : vector<8x1xf32>
    %20 = vector.broadcast %19 : vector<8x1xf32> to vector<8x64xf32>
    %21 = arith.mulf %16, %20 : vector<8x64xf32>
    %22 = vector.broadcast %2 : vector<1x64xf32> to vector<8x64xf32>
    %23 = arith.mulf %21, %22 : vector<8x64xf32>
    %24 = vector.broadcast %3 : vector<1x64xf32> to vector<8x64xf32>
    %25 = arith.addf %23, %24 : vector<8x64xf32>
    %c0_10 = arith.constant 0 : index
    %c0_11 = arith.constant 0 : index
    %26 = vector.load %arg2[%c0_10, %c0_11] : memref<64x192xf32, #tpu.memory_space<vmem>>, vector<64x192xf32>
    %cst_12 = arith.constant dense<0.000000e+00> : vector<8x192xf32>
    %27 = tpu.matmul %25, %26, %cst_12 {dimension_numbers = #tpu.dot_dimension_numbers<[1], [0], [0], [1], [0, 0, 1, 1], [], []>} : vector<8x64xf32>, vector<64x192xf32>, vector<8x192xf32> -> vector<8x192xf32>
    %28 = vector.shape_cast %27 : vector<8x192xf32> to vector<1x8x192xf32>
    %29 = tpu.iota {dimensions = array<i32: 0>} : vector<8x8xi32>
    %30 = tpu.iota {dimensions = array<i32: 1>} : vector<8x8xi32>
    %31 = arith.cmpi sle, %30, %29 : vector<8x8xi32>
    %cst_13 = arith.constant 0.000000e+00 : f32
    %cst_14 = arith.constant -1.000000e+30 : f32
    %32 = vector.broadcast %cst_13 : f32 to vector<8x8xf32>
    %33 = vector.broadcast %cst_14 : f32 to vector<8x8xf32>
    %34 = arith.select %31, %32, %33 : vector<8x8xi1>, vector<8x8xf32>
    %35 = vector.shape_cast %34 : vector<8x8xf32> to vector<1x8x8xf32>
    %36 = vector.extract_strided_slice %28 {offsets = [0, 0, 0], sizes = [1, 8, 16], strides = [1, 1, 1]} : vector<1x8x192xf32> to vector<1x8x16xf32>
    %37 = vector.extract_strided_slice %28 {offsets = [0, 0, 64], sizes = [1, 8, 16], strides = [1, 1, 1]} : vector<1x8x192xf32> to vector<1x8x16xf32>
    %38 = vector.extract_strided_slice %28 {offsets = [0, 0, 128], sizes = [1, 8, 16], strides = [1, 1, 1]} : vector<1x8x192xf32> to vector<1x8x16xf32>
    "tpu.trace_start"() <{level = 10 : i32, message = "bqd,bkd->bqk"}> : () -> ()
    %cst_15 = arith.constant dense<0.000000e+00> : vector<1x8x8xf32>
    %39 = tpu.matmul %36, %37, %cst_15 {dimension_numbers = #tpu.dot_dimension_numbers<[2], [2], [1], [1], [0, 0, 0, 1, 1, 1], [0], [0]>} : vector<1x8x16xf32>, vector<1x8x16xf32>, vector<1x8x8xf32> -> vector<1x8x8xf32>
    "tpu.trace_stop"() : () -> ()
    %cst_16 = arith.constant 1.250000e-01 : f32
    %40 = vector.broadcast %cst_16 : f32 to vector<1x8x8xf32>
    %41 = arith.mulf %39, %40 : vector<1x8x8xf32>
    %42 = arith.addf %41, %35 : vector<1x8x8xf32>
    %cst_17 = arith.constant dense<0xFF800000> : vector<1x8xf32>
    %43 = vector.multi_reduction <maximumf>, %42, %cst_17 [2] : vector<1x8x8xf32> to vector<1x8xf32>
    %44 = vector.shape_cast %43 : vector<1x8xf32> to vector<1x8x1xf32>
    %45 = vector.broadcast %44 : vector<1x8x1xf32> to vector<1x8x8xf32>
    %46 = arith.subf %42, %45 : vector<1x8x8xf32>
    %47 = math.exp %46 : vector<1x8x8xf32>
    %cst_18 = arith.constant dense<0.000000e+00> : vector<1x8xf32>
    %48 = vector.multi_reduction <add>, %47, %cst_18 [2] : vector<1x8x8xf32> to vector<1x8xf32>
    %49 = vector.shape_cast %48 : vector<1x8xf32> to vector<1x8x1xf32>
    %50 = tpu.reciprocal %49 : vector<1x8x1xf32> -> vector<1x8x1xf32>
    %51 = vector.broadcast %50 : vector<1x8x1xf32> to vector<1x8x8xf32>
    %52 = arith.mulf %47, %51 : vector<1x8x8xf32>
    "tpu.trace_start"() <{level = 10 : i32, message = "bqk,bkd->bqd"}> : () -> ()
    %cst_19 = arith.constant dense<0.000000e+00> : vector<1x8x16xf32>
    %53 = tpu.matmul %52, %38, %cst_19 {dimension_numbers = #tpu.dot_dimension_numbers<[2], [1], [1], [2], [0, 0, 0, 1, 1, 2], [0], [0]>} : vector<1x8x8xf32>, vector<1x8x16xf32>, vector<1x8x16xf32> -> vector<1x8x16xf32>
    "tpu.trace_stop"() : () -> ()
    %54 = vector.extract_strided_slice %28 {offsets = [0, 0, 16], sizes = [1, 8, 16], strides = [1, 1, 1]} : vector<1x8x192xf32> to vector<1x8x16xf32>
    %55 = vector.extract_strided_slice %28 {offsets = [0, 0, 80], sizes = [1, 8, 16], strides = [1, 1, 1]} : vector<1x8x192xf32> to vector<1x8x16xf32>
    %56 = vector.extract_strided_slice %28 {offsets = [0, 0, 144], sizes = [1, 8, 16], strides = [1, 1, 1]} : vector<1x8x192xf32> to vector<1x8x16xf32>
    "tpu.trace_start"() <{level = 10 : i32, message = "bqd,bkd->bqk"}> : () -> ()
    %cst_20 = arith.constant dense<0.000000e+00> : vector<1x8x8xf32>
    %57 = tpu.matmul %54, %55, %cst_20 {dimension_numbers = #tpu.dot_dimension_numbers<[2], [2], [1], [1], [0, 0, 0, 1, 1, 1], [0], [0]>} : vector<1x8x16xf32>, vector<1x8x16xf32>, vector<1x8x8xf32> -> vector<1x8x8xf32>
    "tpu.trace_stop"() : () -> ()
    %cst_21 = arith.constant 1.250000e-01 : f32
    %58 = vector.broadcast %cst_21 : f32 to vector<1x8x8xf32>
    %59 = arith.mulf %57, %58 : vector<1x8x8xf32>
    %60 = arith.addf %59, %35 : vector<1x8x8xf32>
    %cst_22 = arith.constant dense<0xFF800000> : vector<1x8xf32>
    %61 = vector.multi_reduction <maximumf>, %60, %cst_22 [2] : vector<1x8x8xf32> to vector<1x8xf32>
    %62 = vector.shape_cast %61 : vector<1x8xf32> to vector<1x8x1xf32>
    %63 = vector.broadcast %62 : vector<1x8x1xf32> to vector<1x8x8xf32>
    %64 = arith.subf %60, %63 : vector<1x8x8xf32>
    %65 = math.exp %64 : vector<1x8x8xf32>
    %cst_23 = arith.constant dense<0.000000e+00> : vector<1x8xf32>
    %66 = vector.multi_reduction <add>, %65, %cst_23 [2] : vector<1x8x8xf32> to vector<1x8xf32>
    %67 = vector.shape_cast %66 : vector<1x8xf32> to vector<1x8x1xf32>
    %68 = tpu.reciprocal %67 : vector<1x8x1xf32> -> vector<1x8x1xf32>
    %69 = vector.broadcast %68 : vector<1x8x1xf32> to vector<1x8x8xf32>
    %70 = arith.mulf %65, %69 : vector<1x8x8xf32>
    "tpu.trace_start"() <{level = 10 : i32, message = "bqk,bkd->bqd"}> : () -> ()
    %cst_24 = arith.constant dense<0.000000e+00> : vector<1x8x16xf32>
    %71 = tpu.matmul %70, %56, %cst_24 {dimension_numbers = #tpu.dot_dimension_numbers<[2], [1], [1], [2], [0, 0, 0, 1, 1, 2], [0], [0]>} : vector<1x8x8xf32>, vector<1x8x16xf32>, vector<1x8x16xf32> -> vector<1x8x16xf32>
    "tpu.trace_stop"() : () -> ()
    %72 = vector.extract_strided_slice %28 {offsets = [0, 0, 32], sizes = [1, 8, 16], strides = [1, 1, 1]} : vector<1x8x192xf32> to vector<1x8x16xf32>
    %73 = vector.extract_strided_slice %28 {offsets = [0, 0, 96], sizes = [1, 8, 16], strides = [1, 1, 1]} : vector<1x8x192xf32> to vector<1x8x16xf32>
    %74 = vector.extract_strided_slice %28 {offsets = [0, 0, 160], sizes = [1, 8, 16], strides = [1, 1, 1]} : vector<1x8x192xf32> to vector<1x8x16xf32>
    "tpu.trace_start"() <{level = 10 : i32, message = "bqd,bkd->bqk"}> : () -> ()
    %cst_25 = arith.constant dense<0.000000e+00> : vector<1x8x8xf32>
    %75 = tpu.matmul %72, %73, %cst_25 {dimension_numbers = #tpu.dot_dimension_numbers<[2], [2], [1], [1], [0, 0, 0, 1, 1, 1], [0], [0]>} : vector<1x8x16xf32>, vector<1x8x16xf32>, vector<1x8x8xf32> -> vector<1x8x8xf32>
    "tpu.trace_stop"() : () -> ()
    %cst_26 = arith.constant 1.250000e-01 : f32
    %76 = vector.broadcast %cst_26 : f32 to vector<1x8x8xf32>
    %77 = arith.mulf %75, %76 : vector<1x8x8xf32>
    %78 = arith.addf %77, %35 : vector<1x8x8xf32>
    %cst_27 = arith.constant dense<0xFF800000> : vector<1x8xf32>
    %79 = vector.multi_reduction <maximumf>, %78, %cst_27 [2] : vector<1x8x8xf32> to vector<1x8xf32>
    %80 = vector.shape_cast %79 : vector<1x8xf32> to vector<1x8x1xf32>
    %81 = vector.broadcast %80 : vector<1x8x1xf32> to vector<1x8x8xf32>
    %82 = arith.subf %78, %81 : vector<1x8x8xf32>
    %83 = math.exp %82 : vector<1x8x8xf32>
    %cst_28 = arith.constant dense<0.000000e+00> : vector<1x8xf32>
    %84 = vector.multi_reduction <add>, %83, %cst_28 [2] : vector<1x8x8xf32> to vector<1x8xf32>
    %85 = vector.shape_cast %84 : vector<1x8xf32> to vector<1x8x1xf32>
    %86 = tpu.reciprocal %85 : vector<1x8x1xf32> -> vector<1x8x1xf32>
    %87 = vector.broadcast %86 : vector<1x8x1xf32> to vector<1x8x8xf32>
    %88 = arith.mulf %83, %87 : vector<1x8x8xf32>
    "tpu.trace_start"() <{level = 10 : i32, message = "bqk,bkd->bqd"}> : () -> ()
    %cst_29 = arith.constant dense<0.000000e+00> : vector<1x8x16xf32>
    %89 = tpu.matmul %88, %74, %cst_29 {dimension_numbers = #tpu.dot_dimension_numbers<[2], [1], [1], [2], [0, 0, 0, 1, 1, 2], [0], [0]>} : vector<1x8x8xf32>, vector<1x8x16xf32>, vector<1x8x16xf32> -> vector<1x8x16xf32>
    "tpu.trace_stop"() : () -> ()
    %90 = vector.extract_strided_slice %28 {offsets = [0, 0, 48], sizes = [1, 8, 16], strides = [1, 1, 1]} : vector<1x8x192xf32> to vector<1x8x16xf32>
    %91 = vector.extract_strided_slice %28 {offsets = [0, 0, 112], sizes = [1, 8, 16], strides = [1, 1, 1]} : vector<1x8x192xf32> to vector<1x8x16xf32>
    %92 = vector.extract_strided_slice %28 {offsets = [0, 0, 176], sizes = [1, 8, 16], strides = [1, 1, 1]} : vector<1x8x192xf32> to vector<1x8x16xf32>
    "tpu.trace_start"() <{level = 10 : i32, message = "bqd,bkd->bqk"}> : () -> ()
    %cst_30 = arith.constant dense<0.000000e+00> : vector<1x8x8xf32>
    %93 = tpu.matmul %90, %91, %cst_30 {dimension_numbers = #tpu.dot_dimension_numbers<[2], [2], [1], [1], [0, 0, 0, 1, 1, 1], [0], [0]>} : vector<1x8x16xf32>, vector<1x8x16xf32>, vector<1x8x8xf32> -> vector<1x8x8xf32>
    "tpu.trace_stop"() : () -> ()
    %cst_31 = arith.constant 1.250000e-01 : f32
    %94 = vector.broadcast %cst_31 : f32 to vector<1x8x8xf32>
    %95 = arith.mulf %93, %94 : vector<1x8x8xf32>
    %96 = arith.addf %95, %35 : vector<1x8x8xf32>
    %cst_32 = arith.constant dense<0xFF800000> : vector<1x8xf32>
    %97 = vector.multi_reduction <maximumf>, %96, %cst_32 [2] : vector<1x8x8xf32> to vector<1x8xf32>
    %98 = vector.shape_cast %97 : vector<1x8xf32> to vector<1x8x1xf32>
    %99 = vector.broadcast %98 : vector<1x8x1xf32> to vector<1x8x8xf32>
    %100 = arith.subf %96, %99 : vector<1x8x8xf32>
    %101 = math.exp %100 : vector<1x8x8xf32>
    %cst_33 = arith.constant dense<0.000000e+00> : vector<1x8xf32>
    %102 = vector.multi_reduction <add>, %101, %cst_33 [2] : vector<1x8x8xf32> to vector<1x8xf32>
    %103 = vector.shape_cast %102 : vector<1x8xf32> to vector<1x8x1xf32>
    %104 = tpu.reciprocal %103 : vector<1x8x1xf32> -> vector<1x8x1xf32>
    %105 = vector.broadcast %104 : vector<1x8x1xf32> to vector<1x8x8xf32>
    %106 = arith.mulf %101, %105 : vector<1x8x8xf32>
    "tpu.trace_start"() <{level = 10 : i32, message = "bqk,bkd->bqd"}> : () -> ()
    %cst_34 = arith.constant dense<0.000000e+00> : vector<1x8x16xf32>
    %107 = tpu.matmul %106, %92, %cst_34 {dimension_numbers = #tpu.dot_dimension_numbers<[2], [1], [1], [2], [0, 0, 0, 1, 1, 2], [0], [0]>} : vector<1x8x8xf32>, vector<1x8x16xf32>, vector<1x8x16xf32> -> vector<1x8x16xf32>
    "tpu.trace_stop"() : () -> ()
    %108 = tpu.concatenate %53, %71, %89, %107 in 2 : vector<1x8x16xf32>, vector<1x8x16xf32>, vector<1x8x16xf32>, vector<1x8x16xf32> -> vector<1x8x64xf32>
    %109 = vector.shape_cast %108 : vector<1x8x64xf32> to vector<8x64xf32>
    %c0_35 = arith.constant 0 : index
    %c0_36 = arith.constant 0 : index
    %110 = vector.load %arg3[%c0_35, %c0_36] : memref<64x64xf32, #tpu.memory_space<vmem>>, vector<64x64xf32>
    %cst_37 = arith.constant dense<0.000000e+00> : vector<8x64xf32>
    %111 = tpu.matmul %109, %110, %cst_37 {dimension_numbers = #tpu.dot_dimension_numbers<[1], [0], [0], [1], [0, 0, 1, 1], [], []>} : vector<8x64xf32>, vector<64x64xf32>, vector<8x64xf32> -> vector<8x64xf32>
    %112 = arith.addf %1, %111 : vector<8x64xf32>
    %c0_38 = arith.constant 0 : index
    %c0_39 = arith.constant 0 : index
    %113 = vector.load %arg4[%c0_38, %c0_39] : memref<1x64xf32, #tpu.memory_space<vmem>>, vector<1x64xf32>
    %114 = vector.broadcast %113 : vector<1x64xf32> to vector<8x64xf32>
    %115 = arith.addf %112, %114 : vector<8x64xf32>
    %c0_40 = arith.constant 0 : index
    %c0_41 = arith.constant 0 : index
    %116 = vector.load %arg7[%c0_40, %c0_41] : memref<1x64xf32, #tpu.memory_space<vmem>>, vector<1x64xf32>
    %c0_42 = arith.constant 0 : index
    %c0_43 = arith.constant 0 : index
    %117 = vector.load %arg8[%c0_42, %c0_43] : memref<1x64xf32, #tpu.memory_space<vmem>>, vector<1x64xf32>
    %cst_44 = arith.constant dense<0.000000e+00> : vector<8xf32>
    %118 = vector.multi_reduction <add>, %115, %cst_44 [1] : vector<8x64xf32> to vector<8xf32>
    %119 = vector.shape_cast %118 : vector<8xf32> to vector<8x1xf32>
    %cst_45 = arith.constant 6.400000e+01 : f32
    %120 = vector.broadcast %cst_45 : f32 to vector<8x1xf32>
    %121 = arith.divf %119, %120 : vector<8x1xf32>
    %122 = vector.broadcast %121 : vector<8x1xf32> to vector<8x64xf32>
    %123 = arith.subf %115, %122 : vector<8x64xf32>
    %124 = arith.mulf %123, %123 : vector<8x64xf32>
    %cst_46 = arith.constant dense<0.000000e+00> : vector<8xf32>
    %125 = vector.multi_reduction <add>, %124, %cst_46 [1] : vector<8x64xf32> to vector<8xf32>
    %126 = vector.shape_cast %125 : vector<8xf32> to vector<8x1xf32>
    %cst_47 = arith.constant 6.400000e+01 : f32
    %127 = vector.broadcast %cst_47 : f32 to vector<8x1xf32>
    %128 = arith.divf %126, %127 : vector<8x1xf32>
    %129 = vector.broadcast %121 : vector<8x1xf32> to vector<8x64xf32>
    %130 = arith.subf %115, %129 : vector<8x64xf32>
    %cst_48 = arith.constant 9.99999974E-6 : f32
    %131 = vector.broadcast %cst_48 : f32 to vector<8x1xf32>
    %132 = arith.addf %128, %131 : vector<8x1xf32>
    %133 = math.rsqrt %132 : vector<8x1xf32>
    %134 = vector.broadcast %133 : vector<8x1xf32> to vector<8x64xf32>
    %135 = arith.mulf %130, %134 : vector<8x64xf32>
    %136 = vector.broadcast %116 : vector<1x64xf32> to vector<8x64xf32>
    %137 = arith.mulf %135, %136 : vector<8x64xf32>
    %138 = vector.broadcast %117 : vector<1x64xf32> to vector<8x64xf32>
    %139 = arith.addf %137, %138 : vector<8x64xf32>
    %c0_49 = arith.constant 0 : index
    %c0_50 = arith.constant 0 : index
    %140 = vector.load %arg9[%c0_49, %c0_50] : memref<64x256xf32, #tpu.memory_space<vmem>>, vector<64x256xf32>
    %cst_51 = arith.constant dense<0.000000e+00> : vector<8x256xf32>
    %141 = tpu.matmul %139, %140, %cst_51 {dimension_numbers = #tpu.dot_dimension_numbers<[1], [0], [0], [1], [0, 0, 1, 1], [], []>} : vector<8x64xf32>, vector<64x256xf32>, vector<8x256xf32> -> vector<8x256xf32>
    %c0_52 = arith.constant 0 : index
    %c0_53 = arith.constant 0 : index
    %142 = vector.load %arg10[%c0_52, %c0_53] : memref<1x256xf32, #tpu.memory_space<vmem>>, vector<1x256xf32>
    %143 = vector.broadcast %142 : vector<1x256xf32> to vector<8x256xf32>
    %144 = arith.addf %141, %143 : vector<8x256xf32>
    %cst_54 = arith.constant 5.000000e-01 : f32
    %145 = vector.broadcast %cst_54 : f32 to vector<8x256xf32>
    %146 = arith.mulf %145, %144 : vector<8x256xf32>
    %cst_55 = arith.constant 0.707106769 : f32
    %147 = vector.broadcast %cst_55 : f32 to vector<8x256xf32>
    %148 = arith.mulf %144, %147 : vector<8x256xf32>
    %149 = math.absf %148 : vector<8x256xf32>
    %cst_56 = arith.constant 0.327591091 : f32
    %150 = vector.broadcast %cst_56 : f32 to vector<8x256xf32>
    %151 = arith.mulf %150, %149 : vector<8x256xf32>
    %cst_57 = arith.constant 1.000000e+00 : f32
    %152 = vector.broadcast %cst_57 : f32 to vector<8x256xf32>
    %153 = arith.addf %152, %151 : vector<8x256xf32>
    %cst_58 = arith.constant 1.000000e+00 : f32
    %154 = vector.broadcast %cst_58 : f32 to vector<8x256xf32>
    %155 = arith.divf %154, %153 : vector<8x256xf32>
    %cst_59 = arith.constant 1.06140542 : f32
    %156 = vector.broadcast %cst_59 : f32 to vector<8x256xf32>
    %157 = arith.mulf %155, %156 : vector<8x256xf32>
    %cst_60 = arith.constant -1.45315206 : f32
    %158 = vector.broadcast %cst_60 : f32 to vector<8x256xf32>
    %159 = arith.addf %158, %157 : vector<8x256xf32>
    %160 = arith.mulf %155, %159 : vector<8x256xf32>
    %cst_61 = arith.constant 1.42141378 : f32
    %161 = vector.broadcast %cst_61 : f32 to vector<8x256xf32>
    %162 = arith.addf %161, %160 : vector<8x256xf32>
    %163 = arith.mulf %155, %162 : vector<8x256xf32>
    %cst_62 = arith.constant -0.284496725 : f32
    %164 = vector.broadcast %cst_62 : f32 to vector<8x256xf32>
    %165 = arith.addf %164, %163 : vector<8x256xf32>
    %166 = arith.mulf %155, %165 : vector<8x256xf32>
    %cst_63 = arith.constant 0.254829586 : f32
    %167 = vector.broadcast %cst_63 : f32 to vector<8x256xf32>
    %168 = arith.addf %167, %166 : vector<8x256xf32>
    %169 = arith.mulf %155, %168 : vector<8x256xf32>
    %cst_64 = arith.constant 0.000000e+00 : f32
    %170 = vector.broadcast %cst_64 : f32 to vector<8x256xf32>
    %171 = arith.subf %170, %149 : vector<8x256xf32>
    %172 = arith.mulf %171, %149 : vector<8x256xf32>
    %173 = math.exp %172 : vector<8x256xf32>
    %174 = arith.mulf %169, %173 : vector<8x256xf32>
    %cst_65 = arith.constant 1.000000e+00 : f32
    %175 = vector.broadcast %cst_65 : f32 to vector<8x256xf32>
    %176 = arith.subf %175, %174 : vector<8x256xf32>
    %cst_66 = arith.constant 0.000000e+00 : f32
    %177 = vector.broadcast %cst_66 : f32 to vector<8x256xf32>
    %178 = arith.cmpf olt, %148, %177 : vector<8x256xf32>
    %cst_67 = arith.constant 0.000000e+00 : f32
    %179 = vector.broadcast %cst_67 : f32 to vector<8x256xf32>
    %180 = arith.subf %179, %176 : vector<8x256xf32>
    %181 = arith.select %178, %180, %176 : vector<8x256xi1>, vector<8x256xf32>
    %cst_68 = arith.constant 1.000000e+00 : f32
    %182 = vector.broadcast %cst_68 : f32 to vector<8x256xf32>
    %183 = arith.addf %182, %181 : vector<8x256xf32>
    %184 = arith.mulf %146, %183 : vector<8x256xf32>
    %c0_69 = arith.constant 0 : index
    %c0_70 = arith.constant 0 : index
    %185 = vector.load %arg11[%c0_69, %c0_70] : memref<256x64xf32, #tpu.memory_space<vmem>>, vector<256x64xf32>
    %cst_71 = arith.constant dense<0.000000e+00> : vector<8x64xf32>
    %186 = tpu.matmul %184, %185, %cst_71 {dimension_numbers = #tpu.dot_dimension_numbers<[1], [0], [0], [1], [0, 0, 1, 1], [], []>} : vector<8x256xf32>, vector<256x64xf32>, vector<8x64xf32> -> vector<8x64xf32>
    %c0_72 = arith.constant 0 : index
    %c0_73 = arith.constant 0 : index
    %187 = vector.load %arg12[%c0_72, %c0_73] : memref<1x64xf32, #tpu.memory_space<vmem>>, vector<1x64xf32>
    %188 = vector.broadcast %187 : vector<1x64xf32> to vector<8x64xf32>
    %189 = arith.addf %186, %188 : vector<8x64xf32>
    %190 = arith.addf %115, %189 : vector<8x64xf32>
    %191 = vector.shape_cast %190 : vector<8x64xf32> to vector<1x8x64xf32>
    %c0_74 = arith.constant 0 : index
    %c0_75 = arith.constant 0 : index
    %c0_76 = arith.constant 0 : index
    %192 = vector.load %arg13[%c0_74, %c0_75, %c0_76] : memref<1x8x64xf32, #tpu.memory_space<vmem>>, vector<1x8x64xf32>
    tpu.vector_store %arg13[%c0_74, %c0_75, %c0_76], %191 {strides = array<i32>} : memref<1x8x64xf32, #tpu.memory_space<vmem>>, vector<1x8x64xf32>,
    return
  }
  func.func @transform_0(%arg0: i32) -> (i32, i32, i32) {
    %c0_i32 = arith.constant 0 : i32
    %c0_i32_0 = arith.constant 0 : i32
    %c0_i32_1 = arith.constant 0 : i32
    return %arg0, %c0_i32, %c0_i32_0 : i32, i32, i32
  }
  func.func @transform_1(%arg0: i32) -> (i32, i32) {
    %c0_i32 = arith.constant 0 : i32
    %c0_i32_0 = arith.constant 0 : i32
    %c0_i32_1 = arith.constant 0 : i32
    return %c0_i32, %c0_i32_0 : i32, i32
  }
  func.func @transform_2(%arg0: i32) -> (i32, i32) {
    %c0_i32 = arith.constant 0 : i32
    %c0_i32_0 = arith.constant 0 : i32
    %c0_i32_1 = arith.constant 0 : i32
    return %c0_i32, %c0_i32_0 : i32, i32
  }
  func.func @transform_3(%arg0: i32) -> (i32, i32) {
    %c0_i32 = arith.constant 0 : i32
    %c0_i32_0 = arith.constant 0 : i32
    %c0_i32_1 = arith.constant 0 : i32
    return %c0_i32, %c0_i32_0 : i32, i32
  }
  func.func @transform_4(%arg0: i32) -> (i32, i32) {
    %c0_i32 = arith.constant 0 : i32
    %c0_i32_0 = arith.constant 0 : i32
    %c0_i32_1 = arith.constant 0 : i32
    return %c0_i32, %c0_i32_0 : i32, i32
  }
  func.func @transform_5(%arg0: i32) -> (i32, i32) {
    %c0_i32 = arith.constant 0 : i32
    %c0_i32_0 = arith.constant 0 : i32
    %c0_i32_1 = arith.constant 0 : i32
    return %c0_i32, %c0_i32_0 : i32, i32
  }
  func.func @transform_6(%arg0: i32) -> (i32, i32) {
    %c0_i32 = arith.constant 0 : i32
    %c0_i32_0 = arith.constant 0 : i32
    %c0_i32_1 = arith.constant 0 : i32
    return %c0_i32, %c0_i32_0 : i32, i32
  }
  func.func @transform_7(%arg0: i32) -> (i32, i32) {
    %c0_i32 = arith.constant 0 : i32
    %c0_i32_0 = arith.constant 0 : i32
    %c0_i32_1 = arith.constant 0 : i32
    return %c0_i32, %c0_i32_0 : i32, i32
  }
  func.func @transform_8(%arg0: i32) -> (i32, i32) {
    %c0_i32 = arith.constant 0 : i32
    %c0_i32_0 = arith.constant 0 : i32
    %c0_i32_1 = arith.constant 0 : i32
    return %c0_i32, %c0_i32_0 : i32, i32
  }
  func.func @transform_9(%arg0: i32) -> (i32, i32) {
    %c0_i32 = arith.constant 0 : i32
    %c0_i32_0 = arith.constant 0 : i32
    %c0_i32_1 = arith.constant 0 : i32
    return %c0_i32, %c0_i32_0 : i32, i32
  }
  func.func @transform_10(%arg0: i32) -> (i32, i32) {
    %c0_i32 = arith.constant 0 : i32
    %c0_i32_0 = arith.constant 0 : i32
    %c0_i32_1 = arith.constant 0 : i32
    return %c0_i32, %c0_i32_0 : i32, i32
  }
  func.func @transform_11(%arg0: i32) -> (i32, i32) {
    %c0_i32 = arith.constant 0 : i32
    %c0_i32_0 = arith.constant 0 : i32
    %c0_i32_1 = arith.constant 0 : i32
    return %c0_i32, %c0_i32_0 : i32, i32
  }
  func.func @transform_12(%arg0: i32) -> (i32, i32, i32) {
    %c0_i32 = arith.constant 0 : i32
    %c0_i32_0 = arith.constant 0 : i32
    %c0_i32_1 = arith.constant 0 : i32
    return %arg0, %c0_i32, %c0_i32_0 : i32, i32, i32
  }
}

</mosaic_0001>

<bundles_post_ra>
// kernel: tpu_custom_call.1
= control target key start
LH: loop header
LB: loop body
LE: loop exit
PB: predicated region body
PF: predicated region fallthrough
CT: control target
= control target key end

     0   :  { %s2555_s0 = inlined_call_operand.vmem [shape: f32[2,8,64], index: 0, kind: input, shape index: {}]   ;;  %s2556_s1 = inlined_call_operand.vmem [shape: f32[64,192], index: 1, kind: input, shape index: {}]   ;;  %s2557_s2 = inlined_call_operand.vmem [shape: f32[64,64], index: 2, kind: input, shape index: {}]   ;;  %s2558_s3 = inlined_call_operand.vmem [shape: f32[1,64], index: 3, kind: input, shape index: {}]   ;;  %s2559_s4 = inlined_call_operand.vmem [shape: f32[1,64], index: 4, kind: input, shape index: {}]   ;;  %s2560_s5 = inlined_call_operand.vmem [shape: f32[1,64], index: 5, kind: input, shape index: {}]   ;;  %s2561_s6 = inlined_call_operand.vmem [shape: f32[1,64], index: 6, kind: input, shape index: {}]   ;;  %s2562_s7 = inlined_call_operand.vmem [shape: f32[1,64], index: 7, kind: input, shape index: {}]   ;;  %s2563_s8 = inlined_call_operand.vmem [shape: f32[64,256], index: 8, kind: input, shape index: {}]   ;;  %s2564_s9 = inlined_call_operand.vmem [shape: f32[1,256], index: 9, kind: input, shape index: {}]   ;;  %s2565_s10 = inlined_call_operand.vmem [shape: f32[256,64], index: 10, kind: input, shape index: {}]   ;;  %s2566_s11 = inlined_call_operand.vmem [shape: f32[1,64], index: 11, kind: input, shape index: {}]   ;;  %s2567_s12 = inlined_call_operand.hbm [shape: f32[2,8,64], index: 12, kind: output, shape index: {}]  }
   0x1   :  { %2569 = sst [smem:[#allocation5_spill]] %s2555_s0 }
   0x2   :  { %2570 = sst [smem:[#allocation6_spill]] %s2556_s1 }
   0x3   :  { %17 = vsyncpa [#allocation3], 0 }
   0x4   :  { %19 = vsyncpa [#allocation3 + $0x1], 0  ;;  %s2125_s21 = smov 0   ;;  %s2127_s22 = smov 0  }
   0x5   :  { %s2129_s23 = smov 0   ;;  %s2131_s24 = smov 0  }
   0x6 LB: > { %s2146_s25 = sadd.s32 4294967295, %s2046_s24   ;;  %s1680_s26 = sadd.s32 4294967294, %s2046_s24   ;;  %s2046_s24 = sphi %s2131_s24, %s2579_s24   ;;  %s2042_s23 = sphi %s2129_s23, %s2578_s23   ;;  %s2038_s22 = sphi %s2127_s22, %s2577_s22   ;;  %s2034_s21 = sphi %s2125_s21, %s2576_s21  }
   0x7   : > { %s2150_s27 = sadd.s32 1, %s2046_s24   ;;  %s289_s28 = sadd.s32 1, %s2042_s23 }
   0x8   : > { %s286_s29 = ssub.s32 %s2046_s24, %s2150_s27  ;;  %p299_p0 = scmp.ne.s32.totalorder %s2042_s23, %s2038_s22 }
   0x9   : > { %p287_p1 = scmp.eq.s32.totalorder %s286_s29, 0  ;;  %p300_p2 = scmp.eq.s32.totalorder %s2146_s25, 1 }
   0xa   : > { %p305_p3 = scmp.ne.s32.totalorder %s2038_s22, %s2034_s21  ;;  %p306_p4 = scmp.eq.s32.totalorder %s1680_s26, 1 }
   0xb   : > { %s2161_s30 = scalar_select %p287_p1, %s2042_s23, %s289_s28  }
   0xc   : > { %p2163_p5 = por %p300_p2, %p299_p0  ;;  %p2167_p6 = por %p306_p4, %p305_p3 }
   0xd   : > { %p1683_p7 = scmp.ge.s32.totalorder %s2046_s24, 1  ;;  %p364_p8 = scmp.lt.s32.totalorder %s2046_s24, 3 }
   0xf   : > { %p365_p9 = pnand %p1683_p7, %p364_p8 }
  0x10   : > { %p405_p10 = scmp.lt.s32.totalorder (!%p365_p9), %s2146_s25, 1  ;;  %vm412_vm0 = vcmask (!%p365_p9), 523264   ;;  %s2573_s0 = sld [smem:[#allocation5_spill]] (!%p365_p9)  ;;  %v2048_v20 = vmov (!%p365_p9), 0.0   ;;  %v1686_v36 = vld [vmem:[%s2559_s4] ss:$0 sm:$0xff] (!%p365_p9)  ;;  %v531_v44 = vlaneseq (!%p365_p9) }
  0x11   : > { %368 = sbr.rel (%p365_p9) target bundleno = 3106 (0xc22), region = 68  ;;  %s2574_s1 = sld [smem:[#allocation6_spill]] (!%p365_p9)  ;;  %524 = vmatprep.mubr.f32.mxu1 (!%p365_p9), %v2048_v20  ;;  %1791 = vmatprep.subr.mxu0 (!%p365_p9), %v2048_v20  ;;  %v1687_v38 = vld [vmem:[%s2560_s5] ss:$0 sm:$0xff] (!%p365_p9)  ;;  %vm2049_vm1 = vmmov (!%p365_p9), 0   ;;  %vm540_vm2 = vcmask (!%p365_p9), 130048  }
  0x12   : > { %1793 = vmatprep.mubr.msk.f32.mxu0 (!%p365_p9), %vm2049_vm1, %v2048_v20  ;;  %s2568_s17 = smov (!%p365_p9), 48   ;;  %s2051_s18 = smov (!%p365_p9), 64   ;;  %v2257_v45 = vshrl.u32 (!%p365_p9), %v531_v44, 7  ;;  %v534_v46 = vand.u32 (!%p365_p9), 127, %v531_v44  ;;  %v2053_v48 = vmov (!%p365_p9), -1e+30  }
  0x13   : > { %vm617_vm4 = vcmask (!%p365_p9), 64512   ;;  %s2055_s20 = smov (!%p365_p9), 32   ;;  %s2056_s26 = smov (!%p365_p9), 16   ;;  %vm1217_vm5 = vcmask (!%p365_p9), 261120   ;;  %vm1219_vm6 = vcmask (!%p365_p9), 392192  }
  0x14   : > { %vm535_vm3 = vcmp.le.s32.totalorder (!%p365_p9), %v534_v46, %v2257_v45  ;;  %s2057_s28 = smov (!%p365_p9), 80   ;;  %s2575_s29 = smov (!%p365_p9), 48  }
  0x15   : > { %v536_v49 = vsel (!%p365_p9), %vm535_vm3, 0.0, %v2053_v48 }
  0x17   : > { %v442_v7 = vld [vmem:[%s2574_s1 + $0x8] sm:$0xff] (!%p365_p9)  ;;  %v444_v8 = vld [vmem:[%s2574_s1 + $0x18] sm:$0xff] (!%p365_p9)  ;;  %v441_v10 = vld [vmem:[%s2574_s1] sm:$0xff] (!%p365_p9) }
  0x18   : > { %s406_s15 = scalar_select %p405_p10, %s2146_s25, 1  ;;  %v1830_v9 = vpack.c.bf16 %v444_v8, %v442_v7  ;;  %v443_v11 = vld [vmem:[%s2574_s1 + $0x10] sm:$0xff]  ;;  %v446_v13 = vld [vmem:[%s2574_s1 + $0x28] sm:$0xff]  ;;  %v448_v14 = vld [vmem:[%s2574_s1 + $0x38] sm:$0xff] }
  0x19   : > { %v1832_v12 = vpack.c.bf16 %v443_v11, %v441_v10  ;;  %v445_v15 = vld [vmem:[%s2574_s1 + $0x20] sm:$0xff]  ;;  %v1834_v16 = vpack.c.bf16 %v448_v14, %v446_v13  ;;  %v447_v17 = vld [vmem:[%s2574_s1 + $0x30] sm:$0xff]  ;;  %v450_v18 = vld [vmem:[%s2574_s1 + $0x48] sm:$0xff] }
  0x1a   : > { %s1685_s16 = sshll.u32 %s406_s15, 3  ;;  %1831 = vmatprep.subr.bf16.mxu1 %v1830_v9  ;;  %v452_v19 = vld [vmem:[%s2574_s1 + $0x58] sm:$0xff]  ;;  %v1836_v21 = vpack.c.bf16 %v447_v17, %v445_v15  ;;  %v449_v23 = vld [vmem:[%s2574_s1 + $0x40] sm:$0xff]  ;;  %v451_v24 = vld [vmem:[%s2574_s1 + $0x50] sm:$0xff] }
  0x1b   : > { %s408_s19 = scalar_lea.vmem %s2573_s0, %s1685_s16  ;;  %1833 = vmatpush1.bf16.msra.mxu1 %v1832_v12  ;;  %v1838_v22 = vpack.c.bf16 %v452_v19, %v450_v18  ;;  %v454_v25 = vld [vmem:[%s2574_s1 + $0x68] sm:$0xff]  ;;  %v456_v26 = vld [vmem:[%s2574_s1 + $0x78] sm:$0xff]  ;;  %v1840_v27 = vpack.c.bf16 %v451_v24, %v449_v23  ;;  %v453_v29 = vld [vmem:[%s2574_s1 + $0x60] sm:$0xff]  ;;  %s2052_s0 = smov 112  }
  0x1c   : > { %v2178_v0 = vld [vmem:[%s408_s19] sm:$0xff]  ;;  %1835 = vmatprep.subr.bf16.mxu1 %v1834_v16  ;;  %v1842_v28 = vpack.c.bf16 %v456_v26, %v454_v25  ;;  %v455_v30 = vld [vmem:[%s2574_s1 + $0x70] sm:$0xff]  ;;  %s2054_s19 = smov 96  }
  0x1d   : > { %v413_v1 = vsel %vm412_vm0, %v2178_v0, 0.0  ;;  %v1844_v31 = vpack.c.bf16 %v455_v30, %v453_v29 }
  0x1e   : > { %414 = vadd.xlane.f32.xlu0 %v413_v1 }
  0x1f   : > { %1837 = vmatpush1.bf16.msra.mxu1 %v1836_v21 }
  0x20   : > { %1839 = vmatprep.subr.bf16.mxu1 %v1838_v22 }
  0x23   : > { %1841 = vmatpush1.bf16.msra.mxu1 %v1840_v27 }
  0x24   : > { %1843 = vmatprep.subr.bf16.mxu1 %v1842_v28 }
  0x27   : > { %1845 = vmatpush1.bf16.msra.mxu1 %v1844_v31 }
  0x28   : > { %1771 = vmatprep.subr.mxu1 %v2048_v20 }
  0xab   : > { %v415_v2 = vpop.xlane.xlu0 %414 }
  0xac   : > { %v417_v3 = vmul.f32 0.015625, %v415_v2 }
  0xae   : > { %v418_v4 = vsub.f32 %v2178_v0, %v417_v3 }
  0xb0   : > { %v419_v5 = vmul.f32 %v418_v4, %v418_v4 }
  0xb2   : > { %v420_v6 = vsel %vm412_vm0, %v419_v5, 0.0 }
  0xb3   : > { %421 = vadd.xlane.f32.xlu0 %v420_v6 }
 0x140   : > { %v422_v32 = vpop.xlane.xlu0 %421 }
 0x141   : > { %v423_v33 = vmul.f32 0.015625, %v422_v32 }
 0x143   : > { %v424_v34 = vadd.f32 1e-05, %v423_v33 }
 0x145   : > { %1956 = vrsqrt.f32 %v424_v34 }
 0x14f   : > { %v1957_v35 = vpop.eup %1956 }
 0x150   : > { %v426_v37 = vmul.f32 %v1957_v35, %v418_v4 }
 0x152   : > { %v433_v39 = vmul.f32 %v1686_v36, %v426_v37 }
 0x154   : > { %v440_v40 = vadd.f32 %v1687_v38, %v433_v39 }
 0x156   : > { %1688 = vmatmul.mubr.msk.f32.vlgmr.msra.gmra.mrb[0].mxu1 %vm412_vm0, %v440_v40 }
 0x157   : > { %1773 = vmatprep.mubr.msk.f32.mxu1 %vm2049_vm1, %v2048_v20 }
 0x229   : > { %v526_v41 = vpop.f32.mrb[0].mxu1 }
 0x22a   : > { %704 = vrot.lane.b32.xlu0 %v526_v41, %s2568_s17  ;;  %538 = vrot.lane.b32.xlu1 %v526_v41, %s2051_s18  ;;  %v2247_v42 = vpop.f32.mrb[1].mxu1  ;;  %s402_s18 = sand.u32 1, %s2038_s22  }
 0x22e   : > { %702 = vrot.lane.b32.xlu0 %v526_v41, %s2052_s0 }
 0x29c   : > { %v539_v43 = vpop.permute.xlu1 %538  ;;  %v705_v59 = vpop.permute.xlu0 %704 }
 0x29d   : > { %1772 = vmatpush3.xpose.msk.msra.mxu1 %vm540_vm2, %v539_v43 }
 0x29e   : > { %1776 = vmatprep.subr.mxu1 %v2048_v20 }
 0x2a0   : > { %1774 = vmatmul.mubr.msk.f32.vlgmr.msra.gmra.mrb[2].mxu1 %vm540_vm2, %v526_v41  ;;  %v703_v60 = vpop.permute.xlu0 %702 }
 0x2a1   : > { %1777 = vmatpush3.msra.mxu1 %v2247_v42  ;;  %1778 = vmatprep.mubr.msk.f32.mxu1 %vm2049_vm1, %v2048_v20 }
 0x2a2   : > { %1781 = vmatprep.subr.mxu1 %v2048_v20 }
 0x373   : > { %v611_v47 = vpop.f32.mrb[2].mxu1 }
 0x374   : > { %v615_v50 = vmul.f32 0.125, %v611_v47  ;;  %v1775_v51 = vpop.f32.mrb[3].mxu1 }
 0x375   : > { %v1221_v51 = vld [vmem:[%s2557_s2] sm:$0xff] }
 0x376   : > { %v616_v52 = vadd.f32 %v615_v50, %v536_v49 }
 0x378   : > { %v618_v53 = vsel %vm617_vm4, %v616_v52, -inf }
 0x379   : > { %619 = vmax.xlane.f32.xlu1 %v618_v53  ;;  %v1223_v53 = vld [vmem:[%s2557_s2 + $0x10] sm:$0xff] }
 0x38a   : > { %870 = vrot.lane.b32.xlu1 %v526_v41, %s2054_s19 }
 0x406   : > { %v620_v54 = vpop.xlane.xlu1 %619 }
 0x407   : > { %v621_v55 = vsub.f32 %v616_v52, %v620_v54  ;;  %v1222_v52 = vld [vmem:[%s2557_s2 + $0x8] sm:$0xff]  ;;  %v2058_v54 = vmov 0.0|0.0  }
 0x409   : > { %v622_v56 = vmul.f32 1.442695, %v621_v55  ;;  %v1847_v55 = vpack.c.bf16 %v1222_v52, %v1221_v51  ;;  %v1703_v52 = vld [vmem:[%s2561_s6] ss:$0 sm:$0xff] }
 0x40a   : > { %v871_v63 = vpop.permute.xlu1 %870 }
 0x40b   : > { %1958 = vpow2.f32 %v622_v56  ;;  %v1224_v56 = vld [vmem:[%s2557_s2 + $0x18] sm:$0xff] }
 0x415   : > { %v1959_v57 = vpop.eup %1958 }
 0x416   : > { %v624_v58 = vsel %vm617_vm4, %v1959_v57, 0.0 }
 0x417   : > { %625 = vadd.xlane.f32.xlu0 %v624_v58  ;;  %v1226_v58 = vld [vmem:[%s2557_s2 + $0x28] sm:$0xff] }
 0x42d   : > { %872 = vrot.lane.b32.xlu0 %v526_v41, %s2055_s20 }
 0x431   : > { %1039 = vrot.lane.b32.xlu0 %v526_v41, %s2056_s26 }
 0x435   : > { %1037 = vrot.lane.b32.xlu0 %v526_v41, %s2057_s28 }
 0x4a4   : > { %v626_v61 = vpop.xlane.xlu0 %625 }
 0x4a5   : > { %1960 = vrcp.f32 %v626_v61  ;;  %v1228_v61 = vld [vmem:[%s2557_s2 + $0x38] sm:$0xff] }
 0x4a8   : > { %v873_v62 = vpop.permute.xlu0 %872 }
 0x4a9   : > { %1792 = vmatpush3.xpose.msk.msra.mxu0 %vm540_vm2, %v873_v62 }
 0x4aa   : > { %1801 = vmatprep.subr.mxu0 %v2048_v20 }
 0x4ac   : > { %v1040_v1 = vpop.permute.xlu0 %1039  ;;  %1794 = vmatmul.mubr.msk.f32.vlgmr.msra.gmra.mrb[0].mxu0 %vm540_vm2, %v871_v63 }
 0x4ad   : > { %1802 = vmatpush3.xpose.msk.msra.mxu0 %vm540_vm2, %v1040_v1  ;;  %1803 = vmatprep.mubr.msk.f32.mxu0 %vm2049_vm1, %v2048_v20 }
 0x4ae   : > { %1846 = vmatprep.subr.bf16.mxu0 %v2058_v54 }
 0x4af   : > { %v1961_v2 = vpop.eup %1960 }
 0x4b0   : > { %v628_v3 = vmul.f32 %v1961_v2, %v1959_v57  ;;  %v1038_v4 = vpop.permute.xlu0 %1037  ;;  %v1225_v57 = vld [vmem:[%s2557_s2 + $0x20] sm:$0xff] }
 0x4b1   : > { %1804 = vmatmul.mubr.msk.f32.vlgmr.msra.gmra.mrb[2].mxu0 %vm540_vm2, %v1038_v4 }
 0x4b2   : > { %1779 = vmatmul.mubr.msk.f32.vlgmr.msra.gmra.mrb[4].mxu1 %vm617_vm4, %v628_v3  ;;  %1827 = vmatprep.mubr.msk.f32.mxu0 %vm2049_vm1, %v2048_v20 }
 0x4b3   : > { %1782 = vmatpush3.xpose.msk.msra.mxu1 %vm540_vm2, %v705_v59  ;;  %1783 = vmatprep.mubr.msk.f32.mxu1 %vm2049_vm1, %v2048_v20  ;;  %v1853_v59 = vpack.c.bf16 %v1226_v58, %v1225_v57  ;;  %v1513_v57 = vld [vmem:[%s2565_s10 + $0x88] sm:$0xff] }
 0x4b4   : > { %1786 = vmatprep.subr.mxu1 %v2048_v20  ;;  %1848 = vmatpush3.bf16.msra.mxu0 %v1847_v55 }
 0x4b5   : > { %1849 = vmatprep.subr.bf16.mxu0 %v2058_v54 }
 0x4b6   : > { %1784 = vmatmul.mubr.msk.f32.vlgmr.msra.gmra.mrb[6].mxu1 %vm540_vm2, %v703_v60  ;;  %v1227_v60 = vld [vmem:[%s2557_s2 + $0x30] sm:$0xff] }
 0x4b7   : > { %1788 = vmatprep.mubr.msk.f32.mxu1 %vm2049_vm1, %v2048_v20  ;;  %v1856_v62 = vpack.c.bf16 %v1228_v61, %v1227_v60  ;;  %v1497_v60 = vld [vmem:[%s2565_s10 + $0x8] sm:$0xff] }
 0x57f   : > { %v944_v5 = vpop.f32.mrb[0].mxu0 }
 0x580   : > { %v948_v6 = vmul.f32 0.125, %v944_v5  ;;  %v1795_v7 = vpop.f32.mrb[1].mxu0 }
 0x582   : > { %v949_v8 = vadd.f32 %v948_v6, %v536_v49 }
 0x584   : > { %v1111_v9 = vpop.f32.mrb[2].mxu0  ;;  %v950_v10 = vsel %vm617_vm4, %v949_v8, -inf }
 0x585   : > { %951 = vmax.xlane.f32.xlu1 %v950_v10  ;;  %v2284_v11 = vpop.f32.mrb[4].mxu1  ;;  %v1805_v12 = vpop.f32.mrb[3].mxu0  ;;  %v1115_v15 = vmul.f32 0.125, %v1111_v9 }
 0x586   : > { %v1780_v13 = vpop.f32.mrb[5].mxu1 }
 0x587   : > { %v1116_v21 = vadd.f32 %v1115_v15, %v536_v49 }
 0x589   : > { %v776_v14 = vpop.f32.mrb[6].mxu1  ;;  %v1117_v22 = vsel %vm617_vm4, %v1116_v21, -inf }
 0x58a   : > { %v780_v16 = vmul.f32 0.125, %v776_v14  ;;  %v1785_v17 = vpop.f32.mrb[7].mxu1  ;;  %v1702_v14 = vld [vmem:[%s2558_s3] ss:$0 sm:$0xff] }
 0x58c   : > { %v781_v18 = vadd.f32 %v780_v16, %v536_v49 }
 0x58e   : > { %v782_v19 = vsel %vm617_vm4, %v781_v18, -inf }
 0x58f   : > { %783 = vmax.xlane.f32.xlu0 %v782_v19 }
 0x593   : > { %1118 = vmax.xlane.f32.xlu0 %v1117_v22 }
 0x596   : > { %794 = vrot.lane.b32.xlu1 %v2247_v42, %s2052_s0  ;;  %s1684_s0 = sshll.u32 %s402_s18, 3 }
 0x59a   : > { %1128 = vrot.lane.b32.xlu1 %v2247_v42, %s2057_s28  ;;  %s1708_s28 = sshll.u32 %s2146_s25, 7  ;;  %s2059_s25 = smov [#allocation2]  }
 0x59b   : > { %s2512_s16 = scalar_lea.hbm %s2567_s12, %s1708_s28 }
 0x612   : > { %v952_v23 = vpop.xlane.xlu1 %951 }
 0x613   : > { %v953_v24 = vsub.f32 %v949_v8, %v952_v23 }
 0x615   : > { %v954_v25 = vmul.f32 1.442695, %v953_v24  ;;  %v1341_v24 = vld [vmem:[%s2563_s8 + $0x8] sm:$0xff] }
 0x616   : > { %v795_v26 = vpop.permute.xlu1 %794 }
 0x617   : > { %1962 = vpow2.f32 %v954_v25  ;;  %1787 = vmatpush3.msra.mxu1 %v795_v26  ;;  %v1340_v26 = vld [vmem:[%s2563_s8] sm:$0xff] }
 0x618   : > { %1796 = vmatprep.subr.mxu1 %v2048_v20 }
 0x61a   : > { %v1129_v49 = vpop.permute.xlu1 %1128 }
 0x61c   : > { %v784_v27 = vpop.xlane.xlu0 %783 }
 0x61d   : > { %v785_v28 = vsub.f32 %v781_v18, %v784_v27  ;;  %v1342_v27 = vld [vmem:[%s2563_s8 + $0x10] sm:$0xff] }
 0x61f   : > { %v786_v33 = vmul.f32 1.442695, %v785_v28  ;;  %v1860_v28 = vpack.c.bf16 %v1342_v27, %v1340_v26  ;;  %v1506_v27 = vld [vmem:[%s2565_s10 + $0x50] sm:$0xff] }
 0x620   : > { %v1119_v29 = vpop.xlane.xlu0 %1118 }
 0x621   : > { %v1963_v30 = vpop.eup %1962  ;;  %v1120_v31 = vsub.f32 %v1116_v21, %v1119_v29  ;;  %v1345_v29 = vld [vmem:[%s2563_s8 + $0x28] sm:$0xff] }
 0x622   : > { %v956_v32 = vsel %vm617_vm4, %v1963_v30, 0.0 }
 0x623   : > { %v1121_v34 = vmul.f32 1.442695, %v1120_v31  ;;  %957 = vadd.xlane.f32.xlu0 %v956_v32  ;;  %v1344_v32 = vld [vmem:[%s2563_s8 + $0x20] sm:$0xff] }
 0x625   : > { %1964 = vpow2.f32 %v1121_v34 }
 0x626   : > { %1966 = vpow2.f32 %v786_v33  ;;  %v1346_v33 = vld [vmem:[%s2563_s8 + $0x30] sm:$0xff] }
 0x627   : > { %v1864_v34 = vpack.c.bf16 %v1346_v33, %v1344_v32  ;;  %v1508_v33 = vld [vmem:[%s2565_s10 + $0x60] sm:$0xff] }
 0x62f   : > { %v1965_v35 = vpop.eup %1964 }
 0x630   : > { %v1123_v36 = vsel %vm617_vm4, %v1965_v35, 0.0  ;;  %v1967_v37 = vpop.eup %1966 }
 0x631   : > { %1124 = vadd.xlane.f32.xlu0 %v1123_v36  ;;  %v788_v38 = vsel %vm617_vm4, %v1967_v37, 0.0  ;;  %v1351_v36 = vld [vmem:[%s2563_s8 + $0x58] sm:$0xff] }
 0x635   : > { %789 = vadd.xlane.f32.xlu0 %v788_v38  ;;  %v1348_v38 = vld [vmem:[%s2563_s8 + $0x40] sm:$0xff] }
 0x64b   : > { %961 = vrot.lane.b32.xlu0 %v2247_v42, %s2054_s19  ;;  %s1608_s19 = scalar_lea.sflag [#allocation3], %s402_s18 }
 0x6b0   : > { %v958_v39 = vpop.xlane.xlu0 %957 }
 0x6be   : > { %v1125_v40 = vpop.xlane.xlu0 %1124 }
 0x6c2   : > { %v790_v41 = vpop.xlane.xlu0 %789 }
 0x6c3   : > { %1968 = vrcp.f32 %v790_v41  ;;  %v1353_v41 = vld [vmem:[%s2563_s8 + $0x68] sm:$0xff] }
 0x6c4   : > { %1970 = vrcp.f32 %v958_v39  ;;  %v1350_v39 = vld [vmem:[%s2563_s8 + $0x50] sm:$0xff] }
 0x6c5   : > { %1972 = vrcp.f32 %v1125_v40  ;;  %v1868_v40 = vpack.c.bf16 %v1350_v39, %v1348_v38  ;;  %v1510_v39 = vld [vmem:[%s2565_s10 + $0x70] sm:$0xff] }
 0x6c6   : > { %v962_v47 = vpop.permute.xlu0 %961 }
 0x6cd   : > { %v1969_v43 = vpop.eup %1968 }
 0x6ce   : > { %v792_v44 = vmul.f32 %v1969_v43, %v1967_v37  ;;  %v1971_v46 = vpop.eup %1970  ;;  %v1355_v43 = vld [vmem:[%s2563_s8 + $0x78] sm:$0xff] }
 0x6cf   : > { %v960_v48 = vmul.f32 %v1971_v46, %v1963_v30  ;;  %v1973_v42 = vpop.eup %1972  ;;  %v1347_v30 = vld [vmem:[%s2563_s8 + $0x38] sm:$0xff]  ;;  %v1352_v46 = vld [vmem:[%s2563_s8 + $0x60] sm:$0xff] }
 0x6d0   : > { %1789 = vmatmul.mubr.msk.f32.vlgmr.msra.gmra.mrb[8].mxu1 %vm617_vm4, %v792_v44  ;;  %v1127_v50 = vmul.f32 %v1973_v42, %v1965_v35  ;;  %v1862_v31 = vpack.c.bf16 %v1347_v30, %v1345_v29  ;;  %v1349_v35 = vld [vmem:[%s2563_s8 + $0x48] sm:$0xff]  ;;  %v1870_v44 = vpack.c.bf16 %v1355_v43, %v1353_v41  ;;  %v1524_v30 = vld [vmem:[%s2565_s10 + $0xe0] sm:$0xff]  ;;  %v1360_v43 = vsub.s32 0, %v2257_v45 }
 0x6d1   : > { %1797 = vmatpush3.msra.mxu1 %v962_v47  ;;  %1798 = vmatprep.mubr.msk.f32.mxu1 %vm2049_vm1, %v2048_v20  ;;  %v1866_v37 = vpack.c.bf16 %v1351_v36, %v1349_v35  ;;  %v1354_v47 = vld [vmem:[%s2563_s8 + $0x70] sm:$0xff] }
 0x6d2   : > { %1806 = vmatprep.subr.mxu1 %v2048_v20  ;;  %v1526_v36 = vld [vmem:[%s2565_s10 + $0xf0] sm:$0xff] }
 0x6d4   : > { %1799 = vmatmul.mubr.msk.f32.vlgmr.msra.gmra.mrb[10].mxu1 %vm617_vm4, %v960_v48  ;;  %v1872_v48 = vpack.c.bf16 %v1354_v47, %v1352_v46  ;;  %v1364_v46 = vsub.s32 1, %v2257_v45 }
 0x6d5   : > { %1807 = vmatpush3.msra.mxu1 %v1129_v49  ;;  %1808 = vmatprep.mubr.msk.f32.mxu1 %vm2049_vm1, %v2048_v20 }
 0x6d8   : > { %1809 = vmatmul.mubr.msk.f32.vlgmr.msra.gmra.mrb[12].mxu1 %vm617_vm4, %v1127_v50 }
 0x6d9   : > { %1435 = vmatprep.mubr.f32.mxu1 %v2048_v20  ;;  %v1850_v20 = vpack.c.bf16 %v1224_v56, %v1223_v53 }
 0x6db   : > { %1851 = vmatpush3.bf16.msra.mxu0 %v1850_v20  ;;  %v1512_v20 = vld [vmem:[%s2565_s10 + $0x80] sm:$0xff] }
 0x6dc   : > { %1852 = vmatprep.subr.bf16.mxu0 %v2058_v54  ;;  %v1874_v58 = vpack.c.bf16 %v1513_v57, %v1512_v20 }
 0x6df   : > { %1854 = vmatpush3.bf16.msra.mxu0 %v1853_v59  ;;  %v1496_v59 = vld [vmem:[%s2565_s10] sm:$0xff] }
 0x6e0   : > { %1855 = vmatprep.subr.bf16.mxu0 %v2058_v54  ;;  %v1704_v54 = vld [vmem:[%s2562_s7] ss:$0 sm:$0xff]  ;;  %v1876_v61 = vpack.c.bf16 %v1497_v60, %v1496_v59 }
 0x6e3   : > { %1857 = vmatpush3.bf16.msra.mxu0 %v1856_v62  ;;  %v1514_v62 = vld [vmem:[%s2565_s10 + $0x90] sm:$0xff] }
 0x6e4   : > { %1875 = vmatprep.subr.bf16.mxu0 %v1874_v58 }
 0x7a3   : > { %v866_v63 = vpop.f32.mrb[8].mxu1 }
 0x7a4   : > { %1205 = vrot.lane.b32.xlu1 %v866_v63, %s2056_s26  ;;  %v1790_v1 = vpop.f32.mrb[9].mxu1  ;;  %v1515_v63 = vld [vmem:[%s2565_s10 + $0x98] sm:$0xff] }
 0x7a5   : > { %v1878_v1 = vpack.c.bf16 %v1515_v63, %v1514_v62 }
 0x7a7   : > { %v1033_v2 = vpop.f32.mrb[10].mxu1 }
 0x7a8   : > { %1209 = vrot.lane.b32.xlu1 %v1033_v2, %s2055_s20  ;;  %v1800_v3 = vpop.f32.mrb[11].mxu1  ;;  %v1498_v2 = vld [vmem:[%s2565_s10 + $0x10] sm:$0xff] }
 0x7a9   : > { %v1499_v3 = vld [vmem:[%s2565_s10 + $0x18] sm:$0xff] }
 0x7ab   : > { %v1200_v4 = vpop.f32.mrb[12].mxu1 }
 0x7ac   : > { %1213 = vrot.lane.b32.xlu0 %v1200_v4, %s2575_s29  ;;  %v1810_v5 = vpop.f32.mrb[13].mxu1  ;;  %v1880_v4 = vpack.c.bf16 %v1499_v3, %v1498_v2  ;;  %s404_s29 = scalar_lea.vmem [#allocation2], %s1684_s0  ;;  %s1988_s0 = sshll.u32 %s2059_s25, 4  ;;  %s1989_s0 = int_to_ptr.vmem [resolvable:$false] %s1988_s0 }
 0x7ad   : > { %v1516_v5 = vld [vmem:[%s2565_s10 + $0xa0] sm:$0xff]  ;;  %s1621_s26 = sshll.u32 %s404_s29, 4  ;;  %s1990_s1 = scalar_lea.vmem %s1989_s0, 256  ;;  %s2514_s26 = int_to_ptr.vmem [resolvable:$true] %s1621_s26 }
 0x7ae   : > { %s1984_s17 = scalar_lea.vmem %s2514_s26, 128  ;;  %p1991_p0 = scmp.lt.s32.totalorder %s2514_s26, %s1989_s0 }
 0x7af   : > { %p1985_p11 = scmp.ne.s32.totalorder %s2514_s26, %s1984_s17  ;;  %p1992_p1 = scmp.lt.s32.totalorder %s1990_s1, %s1984_s17 }
 0x7b1   : > { %p1986_p12 = pnand %p1985_p11, %p2163_p5  ;;  %p1993_p2 = por %p1992_p1, %p1991_p0 }
 0x7b3   : > { %p1987_p13 = pneg %p1986_p12 }
 0x7b5   : > { %p1994_p3 = pnand %p1993_p2, %p1987_p13 }
 0x816   : > { %v1206_v6 = vpop.permute.xlu1 %1205 }
 0x817   : > { %v1216_v8 = vsel %vm540_vm2, %v2284_v11, %v1206_v6  ;;  %v1517_v6 = vld [vmem:[%s2565_s10 + $0xa8] sm:$0xff] }
 0x81a   : > { %v1210_v7 = vpop.permute.xlu1 %1209 }
 0x81b   : > { %v1218_v9 = vsel %vm1217_vm5, %v1216_v8, %v1210_v7  ;;  %v1882_v7 = vpack.c.bf16 %v1517_v6, %v1516_v5  ;;  %v1500_v8 = vld [vmem:[%s2565_s10 + $0x20] sm:$0xff] }
 0x81e   : > { %v1214_v10 = vpop.permute.xlu0 %1213 }
 0x81f   : > { %v1220_v12 = vsel %vm1219_vm6, %v1218_v9, %v1214_v10  ;;  %v1501_v9 = vld [vmem:[%s2565_s10 + $0x28] sm:$0xff] }
 0x820   : > { %1828 = vmatmul.mubr.msk.f32.vlgmr.msra.gmra.mrb[4].mxu0 %vm412_vm0, %v1220_v12  ;;  %v1884_v10 = vpack.c.bf16 %v1501_v9, %v1500_v8  ;;  %v1518_v12 = vld [vmem:[%s2565_s10 + $0xb0] sm:$0xff] }
 0x821   : > { %1877 = vmatpush3.bf16.msra.mxu0 %v1876_v61 }
 0x822   : > { %1879 = vmatprep.subr.bf16.mxu0 %v1878_v1 }
 0x825   : > { %1881 = vmatpush3.bf16.msra.mxu0 %v1880_v4 }
 0x826   : > { %1883 = vmatprep.subr.bf16.mxu0 %v1882_v7 }
 0x829   : > { %1885 = vmatpush3.bf16.msra.mxu0 %v1884_v10 }
 0x8f3   : > { %v1298_v13 = vpop.f32.mrb[4].mxu0 }
 0x8f4   : > { %v1302_v15 = vadd.f32 %v1298_v13, %v2178_v0  ;;  %v1829_v16 = vpop.f32.mrb[5].mxu0  ;;  %v1343_v0 = vld [vmem:[%s2563_s8 + $0x18] sm:$0xff] }
 0x8f5   : > { %v1858_v25 = vpack.c.bf16 %v1343_v0, %v1341_v24  ;;  %v1519_v13 = vld [vmem:[%s2565_s10 + $0xb8] sm:$0xff]  ;;  %v1522_v0 = vld [vmem:[%s2565_s10 + $0xd0] sm:$0xff] }
 0x8f6   : > { %v2341_v17 = vadd.f32 %v1702_v14, %v1302_v15  ;;  %v1886_v14 = vpack.c.bf16 %v1519_v13, %v1518_v12  ;;  %v1502_v15 = vld [vmem:[%s2565_s10 + $0x30] sm:$0xff]  ;;  %v1503_v16 = vld [vmem:[%s2565_s10 + $0x38] sm:$0xff] }
 0x8f7   : > { %1859 = vmatprep.subr.bf16.mxu1 %v1858_v25  ;;  %v1523_v25 = vld [vmem:[%s2565_s10 + $0xd8] sm:$0xff] }
 0x8f8   : > { %v1313_v18 = vsel %vm412_vm0, %v2341_v17, 0.0  ;;  %1861 = vmatpush1.bf16.msra.mxu1 %v1860_v28  ;;  %1887 = vmatprep.subr.bf16.mxu0 %v1886_v14  ;;  %v1894_v26 = vpack.c.bf16 %v1523_v25, %v1522_v0  ;;  %v1507_v28 = vld [vmem:[%s2565_s10 + $0x58] sm:$0xff] }
 0x8f9   : > { %1314 = vadd.xlane.f32.xlu1 %v1313_v18  ;;  %1863 = vmatprep.subr.bf16.mxu1 %v1862_v31  ;;  %v1888_v18 = vpack.c.bf16 %v1503_v16, %v1502_v15  ;;  %v1896_v29 = vpack.c.bf16 %v1507_v28, %v1506_v27  ;;  %v1525_v31 = vld [vmem:[%s2565_s10 + $0xe8] sm:$0xff] }
 0x8fa   : > { %v1898_v32 = vpack.c.bf16 %v1525_v31, %v1524_v30 }
 0x8fb   : > { %1889 = vmatpush3.bf16.msra.mxu0 %v1888_v18 }
 0x8fc   : > { %1865 = vmatpush1.bf16.msra.mxu1 %v1864_v34  ;;  %v1509_v34 = vld [vmem:[%s2565_s10 + $0x68] sm:$0xff] }
 0x8fd   : > { %1867 = vmatprep.subr.bf16.mxu1 %v1866_v37  ;;  %v1900_v35 = vpack.c.bf16 %v1509_v34, %v1508_v33  ;;  %v1527_v37 = vld [vmem:[%s2565_s10 + $0xf8] sm:$0xff] }
 0x8fe   : > { %v1902_v38 = vpack.c.bf16 %v1527_v37, %v1526_v36 }
 0x900   : > { %1869 = vmatpush1.bf16.msra.mxu1 %v1868_v40  ;;  %v1511_v40 = vld [vmem:[%s2565_s10 + $0x78] sm:$0xff] }
 0x901   : > { %1871 = vmatprep.subr.bf16.mxu1 %v1870_v44  ;;  %v1904_v41 = vpack.c.bf16 %v1511_v40, %v1510_v39  ;;  %v1356_v44 = vld [vmem:[%s2564_s9] sm:$0x3] }
 0x902   : > { %v1361_v47 = vrot.slane %v1356_v44, %v1360_v43  ;;  %v1706_v39 = vld [vmem:[%s2566_s11] ss:$0 sm:$0xff] }
 0x904   : > { %1873 = vmatpush1.bf16.msra.mxu1 %v1872_v48  ;;  %v1365_v48 = vrot.slane %v1356_v44, %v1364_v46 }
 0x986   : > { %v1315_v11 = vpop.xlane.xlu1 %1314 }
 0x987   : > { %v1316_v19 = vmul.f32 0.015625, %v1315_v11  ;;  %v1520_v11 = vld [vmem:[%s2565_s10 + $0xc0] sm:$0xff] }
 0x989   : > { %v1317_v21 = vsub.f32 %v2341_v17, %v1316_v19  ;;  %v1521_v19 = vld [vmem:[%s2565_s10 + $0xc8] sm:$0xff] }
 0x98b   : > { %v1318_v22 = vmul.f32 %v1317_v21, %v1317_v21 }
 0x98d   : > { %v1319_v23 = vsel %vm412_vm0, %v1318_v22, 0.0  ;;  %v1504_v22 = vld [vmem:[%s2565_s10 + $0x40] sm:$0xff] }
 0x98e   : > { %1320 = vadd.xlane.f32.xlu0 %v1319_v23  ;;  %v1505_v23 = vld [vmem:[%s2565_s10 + $0x48] sm:$0xff] }
 0x98f   : > { %v1892_v24 = vpack.c.bf16 %v1505_v23, %v1504_v22 }
 0xa1b   : > { %v1321_v42 = vpop.xlane.xlu0 %1320 }
 0xa1c   : > { %v1322_v49 = vmul.f32 0.015625, %v1321_v42 }
 0xa1e   : > { %v1323_v50 = vadd.f32 1e-05, %v1322_v49 }
 0xa20   : > { %1974 = vrsqrt.f32 %v1323_v50 }
 0xa2a   : > { %v1975_v51 = vpop.eup %1974 }
 0xa2b   : > { %v1325_v53 = vmul.f32 %v1975_v51, %v1317_v21  ;;  %v1890_v21 = vpack.c.bf16 %v1521_v19, %v1520_v11 }
 0xa2d   : > { %v1332_v55 = vmul.f32 %v1703_v52, %v1325_v53  ;;  %1891 = vmatprep.subr.bf16.mxu0 %v1890_v21 }
 0xa2e   : > { %1893 = vmatpush3.bf16.msra.mxu0 %v1892_v24 }
 0xa2f   : > { %v1339_v56 = vadd.f32 %v1704_v54, %v1332_v55  ;;  %1895 = vmatprep.subr.bf16.mxu0 %v1894_v26 }
 0xa31   : > { %1705 = vmatmul.mubr.msk.f32.vlgmr.msra.gmra.mrb[14].mxu1 %vm412_vm0, %v1339_v56 }
 0xa32   : > { %1897 = vmatpush3.bf16.msra.mxu0 %v1896_v29 }
 0xa33   : > { %1899 = vmatprep.subr.bf16.mxu0 %v1898_v32 }
 0xa36   : > { %1901 = vmatpush3.bf16.msra.mxu0 %v1900_v35 }
 0xa37   : > { %1903 = vmatprep.subr.bf16.mxu0 %v1902_v38 }
 0xa3a   : > { %1905 = vmatpush3.bf16.msra.mxu0 %v1904_v41 }
 0xb04   : > { %v1437_v42 = vpop.f32.mrb[14].mxu1 }
 0xb05   : > { %v1438_v49 = vadd.f32 %v1437_v42, %v1361_v47  ;;  %v1439_v50 = vpop.f32.mrb[15].mxu1 }
 0xb06   : > { %v1440_v51 = vadd.f32 %v1439_v50, %v1365_v48 }
 0xb07   : > { %v1444_v52 = vmul.f32 0.70710677, %v1438_v49  ;;  %v1442_v35 = vmul.f32 0.5, %v1438_v49 }
 0xb08   : > { %v1445_v53 = vmul.f32 0.70710677, %v1440_v51  ;;  %v1443_v33 = vmul.f32 0.5, %v1440_v51 }
 0xb09   : > { %v1446_v54 = vand.u32 2147483647, %v1444_v52  ;;  %vm1486_vm7 = vcmp.lt.f32.partialorder %v1444_v52, 0.0 }
 0xb0a   : > { %v1447_v55 = vand.u32 2147483647, %v1445_v53  ;;  %vm1487_vm8 = vcmp.lt.f32.partialorder %v1445_v53, 0.0 }
 0xb0b   : > { %v1448_v56 = vmul.f32 0.3275911, %v1446_v54  ;;  %v1474_v59 = vsub.f32 0.0, %v1446_v54 }
 0xb0c   : > { %v1449_v20 = vmul.f32 0.3275911, %v1447_v55  ;;  %v1475_v60 = vsub.f32 0.0, %v1447_v55 }
 0xb0d   : > { %v1450_v57 = vadd.f32 1.0, %v1448_v56  ;;  %v1476_v45 = vmul.f32 %v1474_v59, %v1446_v54 }
 0xb0e   : > { %v1451_v58 = vadd.f32 1.0, %v1449_v20  ;;  %v1477_v1 = vmul.f32 %v1475_v60, %v1447_v55 }
 0xb0f   : > { %1976 = vrcp.f32 %v1450_v57  ;;  %v1478_v4 = vmul.f32 1.442695, %v1476_v45 }
 0xb10   : > { %1978 = vrcp.f32 %v1451_v58  ;;  %v1480_v7 = vmul.f32 1.442695, %v1477_v1 }
 0xb11   : > { %1980 = vpow2.f32 %v1478_v4 }
 0xb12   : > { %1982 = vpow2.f32 %v1480_v7 }
 0xb19   : > { %v1977_v61 = vpop.eup %1976 }
 0xb1a   : > { %v1979_v62 = vpop.eup %1978  ;;  %v1456_v63 = vmul.f32 1.0614054, %v1977_v61 }
 0xb1b   : > { %v1457_v2 = vmul.f32 1.0614054, %v1979_v62  ;;  %v1981_v22 = vpop.eup %1980 }
 0xb1c   : > { %v1458_v3 = vadd.f32 -1.4531521, %v1456_v63  ;;  %v1983_v24 = vpop.eup %1982 }
 0xb1d   : > { %v1459_v5 = vadd.f32 -1.4531521, %v1457_v2 }
 0xb1e   : > { %v1460_v6 = vmul.f32 %v1977_v61, %v1458_v3 }
 0xb1f   : > { %v1461_v8 = vmul.f32 %v1979_v62, %v1459_v5 }
 0xb20   : > { %v1462_v9 = vadd.f32 1.4214138, %v1460_v6 }
 0xb21   : > { %v1463_v10 = vadd.f32 1.4214138, %v1461_v8 }
 0xb22   : > { %v1464_v12 = vmul.f32 %v1977_v61, %v1462_v9 }
 0xb23   : > { %v1465_v13 = vmul.f32 %v1979_v62, %v1463_v10 }
 0xb24   : > { %v1466_v14 = vadd.f32 -0.28449672, %v1464_v12 }
 0xb25   : > { %v1467_v15 = vadd.f32 -0.28449672, %v1465_v13 }
 0xb26   : > { %v1468_v16 = vmul.f32 %v1977_v61, %v1466_v14 }
 0xb27   : > { %v1469_v18 = vmul.f32 %v1979_v62, %v1467_v15 }
 0xb28   : > { %v1470_v11 = vadd.f32 0.2548296, %v1468_v16 }
 0xb29   : > { %v1471_v19 = vadd.f32 0.2548296, %v1469_v18 }
 0xb2a   : > { %v1472_v21 = vmul.f32 %v1977_v61, %v1470_v11 }
 0xb2b   : > { %v1473_v23 = vmul.f32 %v1979_v62, %v1471_v19 }
 0xb2c   : > { %v1482_v0 = vmul.f32 %v1981_v22, %v1472_v21 }
 0xb2d   : > { %v1483_v25 = vmul.f32 %v1983_v24, %v1473_v23 }
 0xb2e   : > { %v1484_v26 = vsub.f32 1.0, %v1482_v0 }
 0xb2f   : > { %v1485_v27 = vsub.f32 1.0, %v1483_v25 }
 0xb30   : > { %v1488_v28 = vsub.f32 0.0, %v1484_v26 }
 0xb31   : > { %v1489_v29 = vsub.f32 0.0, %v1485_v27 }
 0xb32   : > { %v1490_v30 = vsel %vm1486_vm7, %v1488_v28, %v1484_v26 }
 0xb33   : > { %v1492_v31 = vadd.f32 1.0, %v1490_v30  ;;  %v1491_v32 = vsel %vm1487_vm8, %v1489_v29, %v1485_v27 }
 0xb34   : > { %v1493_v34 = vadd.f32 1.0, %v1491_v32 }
 0xb35   : > { %v1494_v37 = vmul.f32 %v1492_v31, %v1442_v35 }
 0xb36   : > { %v1495_v36 = vmul.f32 %v1493_v34, %v1443_v33 }
 0xb38   : > { %1599 = vmatprep.mubr.f32.mxu0 %v1495_v36 }
 0xb39   : > { %1600 = vmatmul.mubr.f32.vlgmr.msra.gmra.mrb[6].mxu0 %v1494_v37 }
 0xc0c   : > { %v1768_v38 = vpop.f32.mrb[6].mxu0 }
 0xc0d   : > { %v1769_v40 = vpop.f32.mrb[7].mxu0 }
 0xc0e   : > { %v1770_v41 = vadd.f32 %v1769_v40, %v1768_v38 }
 0xc10   : > { %v1602_v43 = vadd.f32 %v1770_v41, %v1706_v39 }
 0xc12   : > { %v1605_v44 = vadd.f32 %v1602_v43, %v2341_v17 }
 0xc14   : > { %1606 = vst.msk [vmem:[%s404_s29] sm:$0xff] %vm412_vm0, %v1605_v44 }
 0xc15   : > { %1997 = shalt.err (!%p1994_p3)
}
 0xc16   : > { %s1998_s18 = scalar_lea.hbm %s2512_s16, 128  ;;  %s2002_s20 = scalar_lea.hbm %s2567_s12, 256 }
 0xc17   : > { %p1999_p4 = scmp.ne.s32.totalorder %s2512_s16, %s1998_s18  ;;  %p2003_p9 = scmp.lt.u32.totalorder %s2512_s16, %s2567_s12 }
 0xc18   : > { %p2004_p10 = scmp.lt.u32.totalorder %s2002_s20, %s1998_s18  ;;  %p2006_p12 = scmp.lt.u32.totalorder %s1998_s18, %s2512_s16 }
 0xc19   : > { %p2000_p7 = pnand %p1999_p4, %p2163_p5 }
 0xc1a   : > { %p2005_p11 = por %p2004_p10, %p2003_p9 }
 0xc1b   : > { %p2001_p8 = pneg %p2000_p7 }
 0xc1c   : > { %p2007_p13 = por %p2006_p12, %p2005_p11 }
 0xc1e   : > { %p2008_p0 = pnand %p2007_p13, %p2001_p8 }
 0xc20   : > { %2011 = shalt.err (!%p2008_p0)
}
 0xc21   : > { %1906 = dma.vmem_to_hbm [thread:$0]  (%p2163_p5), %s2514_s26, 128, %s2512_s16, %s1608_s19  }
 0xc22 PF: > { %p1912_p1 = scmp.ge.s32.totalorder %s2046_s24, 2  ;;  %s1633_s1 = sand.u32 1, %s2034_s21  }
 0xc23   : > { %s1634_s17 = scalar_lea.sflag [#allocation3], %s1633_s1 }
 0xc24   : > { %p1909_p2 = pnand %p1912_p1, %p2167_p6 }
 0xc26   : > { %2029 = dma.done.wait (!%p1909_p2), %s1634_s17, 128  }
 0xc27   : > { %2031 = vsyncadd (!%p1909_p2), %s1634_s17, 4294967168  ;;  %p22_p3 = scmp.ge.s32.totalorder %s2150_s27, 4   ;;  %s2576_s21 = smov %s2038_s22 }
 0xc28   : > { %s2577_s22 = smov %s2042_s23  ;;  %s2578_s23 = smov %s2161_s30 }
 0xc29   : > { %s2579_s24 = smov %s2150_s27  ;;  %24 = sbr.rel (!%p22_p3) target bundleno = 6 (0x6), region = 103 }
 0xc30   :  { %1639 = vsyncpa [#allocation3], 1 }
 0xc31   :  { %1641 = vsyncpa [#allocation3 + $0x1], 1 }

</bundles_post_ra>
